<compile_context>
chip_gen: v6e
topology: v6e:2x2x1
jax: 0.10.0
libtpu: 0.0.40
codegen_flags: <defaults>
</compile_context>

<pallas_src>
import functools

import jax
import jax.numpy as jnp
from jax import lax
from jax.experimental import pallas as pl
from jax.experimental.pallas import tpu as pltpu


def grunet_kernel(xf_ref, wih_ref, whh_ref, bx_ref, bhn_ref, wlin_ref, blin_ref,
                  out_ref):
    """Fused layer-0 GRU recurrence + linear head.

    xf_ref:   (T*B, F)   time-major, batch-flattened input (bf16)
    wih_ref:  (F, 3*128) gate-stacked input weights, lane-aligned [r|z|n] (bf16)
    whh_ref:  (128, 3*128) gate-stacked hidden weights, zero-padded rows (bf16)
    bx_ref:   (1, 3*128) bih + [bhh_r, bhh_z, 0], lane-aligned, f32
    bhn_ref:  (1, 128)   bhh_n (must stay inside r * (...) per PyTorch), f32
    wlin_ref: (1, 128)   linear weight, transposed + zero-padded, f32
    blin_ref: (1, 1)     linear bias, f32
    out_ref:  (B, 1)     linear(hn[0])
    """
    TB, _F = xf_ref.shape
    Hp, G3 = whh_ref.shape                       # Hp == 128, G3 == 3*128
    G = G3 // 3                                  # 128 (lane-aligned gate width)
    B = out_ref.shape[0]
    T = TB // B

    whh = whh_ref[...]                           # (128, 384) bf16, resident all steps
    # Hoist broadcasts once (JAX does not CSE broadcast_in_dim per iteration).
    bhn = jnp.broadcast_to(bhn_ref[...], (B, G))
    wlin = wlin_ref[...]                         # (1, 128)

    # Single batched input projection — off the serial h-dependency chain.
    xp_all = (jnp.dot(xf_ref[...], wih_ref[...],
                      preferred_element_type=jnp.float32)
              + bx_ref[...])                     # (T*B, 384) f32

    # Fully unrolled recurrence (T static) -> one gate-stacked bf16 matmul per step.
    h = jnp.zeros((B, G), jnp.float32)           # padded lanes stay exactly 0
    for t in range(T):
        xp_t = xp_all[t * B:(t + 1) * B, :]      # (B, 384), static slice
        hp = jnp.dot(h.astype(jnp.bfloat16), whh,
                     preferred_element_type=jnp.float32)          # (B, 384)
        rz = jax.nn.sigmoid(xp_t[:, :2 * G] + hp[:, :2 * G])      # fused r/z sigmoid
        r = rz[:, :G]
        z = rz[:, G:2 * G]
        n = jnp.tanh(xp_t[:, 2 * G:] + r * (hp[:, 2 * G:] + bhn))
        h = (1.0 - z) * n + z * h

    # Linear head on hn[0]: VPU multiply + XLU lane reduce (no MXU).
    out_ref[...] = (jnp.sum(h * wlin, axis=-1, keepdims=True) + blin_ref[...])


def _pack_gates(a, H, G):
    """(R, 3H) gate-stacked [r,z,n] -> (R, 3G): each gate zero-padded to G lanes."""
    parts = [jnp.pad(a[:, g * H:(g + 1) * H], ((0, 0), (0, G - H)))
             for g in range(3)]
    return jnp.concatenate(parts, axis=-1)


@jax.jit
def grunet_forward(x, params):
    """x: (B, T, F) float32 -> (B,) float32  (matches GRUNet.forward)."""
    B, T, F = x.shape
    H = params["whh"].shape[0]
    G = 128                                               # lane-aligned gate width
    assert H <= G

    # Time-major, batch-flattened -> ONE input-projection matmul in the kernel.
    x_flat = (jnp.transpose(x, (1, 0, 2))
              .reshape(T * B, F)
              .astype(jnp.bfloat16))                      # (T*B, F)

    # Fold r/z hidden biases into the x-projection bias; bhh_n stays inside r*().
    bih, bhh = params["bih"], params["bhh"]               # (1, 3H) each
    bx = bih.at[:, :2 * H].add(bhh[:, :2 * H])            # (1, 3H)

    wih = _pack_gates(params["wih"], H, G).astype(jnp.bfloat16)          # (F, 3G)
    whh = jnp.pad(_pack_gates(params["whh"], H, G),
                  ((0, G - H), (0, 0))).astype(jnp.bfloat16)             # (G, 3G)
    bx_p = _pack_gates(bx, H, G)                                         # (1, 3G)
    bhn = jnp.pad(bhh[:, 2 * H:], ((0, 0), (0, G - H)))                  # (1, G)
    wlin = jnp.pad(params["wlin"].T, ((0, 0), (0, G - H)))               # (1, G)
    blin = params["blin"]                                                # (1, 1)

    vmem = pl.BlockSpec(memory_space=pltpu.MemorySpace.VMEM)
    out = pl.pallas_call(
        grunet_kernel,
        out_shape=jax.ShapeDtypeStruct((B, 1), jnp.float32),
        in_specs=[vmem] * 7,
        out_specs=vmem,
    )(x_flat, wih, whh, bx_p, bhn, wlin, blin)
    return out[:, 0]  # .flatten()


def init_params(key, num_features, hidden_units):
    """Deterministic gate-stacked params (gate order [r, z, n] along last dim)."""
    H, F = hidden_units, num_features
    scale = 1.0 / jnp.sqrt(jnp.float32(H))
    ks = jax.random.split(key, 6)

    def u(k, shape):
        return jax.random.uniform(k, shape, jnp.float32, -scale, scale)

    return {
        "wih": u(ks[0], (F, 3 * H)),
        "whh": u(ks[1], (H, 3 * H)),
        "bih": u(ks[2], (1, 3 * H)),
        "bhh": u(ks[3], (1, 3 * H)),
        "wlin": u(ks[4], (H, 1)),
        "blin": u(ks[5], (1, 1)),
    }


def reference_forward(x, p):
    """Pure-JAX f32 reference with PyTorch GRU cell semantics (for self-check)."""
    B = x.shape[0]
    H = p["whh"].shape[0]

    def cell(h, x_t):
        xp = x_t @ p["wih"] + p["bih"]          # W_i* x + b_i*
        hp = h @ p["whh"] + p["bhh"]            # W_h* h + b_h*
        r = jax.nn.sigmoid(xp[:, :H] + hp[:, :H])
        z = jax.nn.sigmoid(xp[:, H:2 * H] + hp[:, H:2 * H])
        n = jnp.tanh(xp[:, 2 * H:] + r * hp[:, 2 * H:])
        h_new = (1.0 - z) * n + z * h
        return h_new, None

    xs = jnp.transpose(x, (1, 0, 2))            # (T, B, F)
    h0, _ = lax.scan(cell, jnp.zeros((B, H), jnp.float32), xs)
    return (h0 @ p["wlin"] + p["blin"])[:, 0]


if __name__ == "__main__":
    batch, seq, num_features, hidden_units = 2, 8, 4, 32

    key = jax.random.PRNGKey(0)
    k_x, k_p = jax.random.split(key)
    x = jax.random.normal(k_x, (batch, seq, num_features), jnp.float32)
    params = init_params(k_p, num_features, hidden_units)

    out = jax.block_until_ready(grunet_forward(x, params))
    ref = reference_forward(x, params)

    assert out.shape == (batch,)
    # bf16 MXU operands in the kernel -> relaxed tolerance vs the f32 reference.
    assert jnp.allclose(out, ref, atol=2e-2, rtol=2e-2), (out, ref)

    print("KERNEL_OK")
</pallas_src>

<mosaic_0001>
module attributes {stable_mosaic.version = 11 : i64} {
  func.func @grunet_kernel(%arg0: memref<16x4xbf16, #tpu.memory_space<vmem>>, %arg1: memref<4x384xbf16, #tpu.memory_space<vmem>>, %arg2: memref<128x384xbf16, #tpu.memory_space<vmem>>, %arg3: memref<1x384xf32, #tpu.memory_space<vmem>>, %arg4: memref<1x128xf32, #tpu.memory_space<vmem>>, %arg5: memref<1x128xf32, #tpu.memory_space<vmem>>, %arg6: memref<1x1xf32, #tpu.memory_space<vmem>>, %arg7: memref<2x1xf32, #tpu.memory_space<vmem>>) attributes {dimension_semantics = [], scalar_prefetch = 0 : i64, scratch_operands = 0 : i64, tpu.core_type = #tpu.core_type<tc>} {
    %c0 = arith.constant 0 : index
    %c0_0 = arith.constant 0 : index
    %0 = vector.load %arg2[%c0, %c0_0] : memref<128x384xbf16, #tpu.memory_space<vmem>>, vector<128x384xbf16>
    %c0_1 = arith.constant 0 : index
    %c0_2 = arith.constant 0 : index
    %1 = vector.load %arg4[%c0_1, %c0_2] : memref<1x128xf32, #tpu.memory_space<vmem>>, vector<1x128xf32>
    %2 = vector.shape_cast %1 : vector<1x128xf32> to vector<1x128xf32>
    %3 = vector.broadcast %2 : vector<1x128xf32> to vector<2x128xf32>
    %c0_3 = arith.constant 0 : index
    %c0_4 = arith.constant 0 : index
    %4 = vector.load %arg5[%c0_3, %c0_4] : memref<1x128xf32, #tpu.memory_space<vmem>>, vector<1x128xf32>
    %c0_5 = arith.constant 0 : index
    %c0_6 = arith.constant 0 : index
    %5 = vector.load %arg0[%c0_5, %c0_6] : memref<16x4xbf16, #tpu.memory_space<vmem>>, vector<16x4xbf16>
    %c0_7 = arith.constant 0 : index
    %c0_8 = arith.constant 0 : index
    %6 = vector.load %arg1[%c0_7, %c0_8] : memref<4x384xbf16, #tpu.memory_space<vmem>>, vector<4x384xbf16>
    %cst = arith.constant dense<0.000000e+00> : vector<16x384xf32>
    %7 = tpu.matmul %5, %6, %cst {dimension_numbers = #tpu.dot_dimension_numbers<[1], [0], [0], [1], [0, 0, 1, 1], [], []>} : vector<16x4xbf16>, vector<4x384xbf16>, vector<16x384xf32> -> vector<16x384xf32>
    %c0_9 = arith.constant 0 : index
    %c0_10 = arith.constant 0 : index
    %8 = vector.load %arg3[%c0_9, %c0_10] : memref<1x384xf32, #tpu.memory_space<vmem>>, vector<1x384xf32>
    %9 = vector.broadcast %8 : vector<1x384xf32> to vector<16x384xf32>
    %10 = arith.addf %7, %9 : vector<16x384xf32>
    %cst_11 = arith.constant 0.000000e+00 : f32
    %11 = vector.broadcast %cst_11 : f32 to vector<2x128xf32>
    %12 = vector.extract_strided_slice %10 {offsets = [0, 0], sizes = [2, 384], strides = [1, 1]} : vector<16x384xf32> to vector<2x384xf32>
    %13 = arith.truncf %11 : vector<2x128xf32> to vector<2x128xbf16>
    %cst_12 = arith.constant dense<0.000000e+00> : vector<2x384xf32>
    %14 = tpu.matmul %13, %0, %cst_12 {dimension_numbers = #tpu.dot_dimension_numbers<[1], [0], [0], [1], [0, 0, 1, 1], [], []>} : vector<2x128xbf16>, vector<128x384xbf16>, vector<2x384xf32> -> vector<2x384xf32>
    %15 = vector.extract_strided_slice %12 {offsets = [0, 0], sizes = [2, 256], strides = [1, 1]} : vector<2x384xf32> to vector<2x256xf32>
    %16 = vector.extract_strided_slice %14 {offsets = [0, 0], sizes = [2, 256], strides = [1, 1]} : vector<2x384xf32> to vector<2x256xf32>
    %17 = arith.addf %15, %16 : vector<2x256xf32>
    %18 = arith.negf %17 : vector<2x256xf32>
    %19 = math.exp %18 : vector<2x256xf32>
    %cst_13 = arith.constant 1.000000e+00 : f32
    %20 = vector.broadcast %cst_13 : f32 to vector<2x256xf32>
    %21 = arith.addf %20, %19 : vector<2x256xf32>
    %22 = arith.divf %20, %21 : vector<2x256xf32>
    %23 = vector.extract_strided_slice %22 {offsets = [0, 0], sizes = [2, 128], strides = [1, 1]} : vector<2x256xf32> to vector<2x128xf32>
    %24 = vector.extract_strided_slice %22 {offsets = [0, 128], sizes = [2, 128], strides = [1, 1]} : vector<2x256xf32> to vector<2x128xf32>
    %25 = vector.extract_strided_slice %12 {offsets = [0, 256], sizes = [2, 128], strides = [1, 1]} : vector<2x384xf32> to vector<2x128xf32>
    %26 = vector.extract_strided_slice %14 {offsets = [0, 256], sizes = [2, 128], strides = [1, 1]} : vector<2x384xf32> to vector<2x128xf32>
    %27 = arith.addf %26, %3 : vector<2x128xf32>
    %28 = arith.mulf %23, %27 : vector<2x128xf32>
    %29 = arith.addf %25, %28 : vector<2x128xf32>
    %30 = math.tanh %29 : vector<2x128xf32>
    %cst_14 = arith.constant 1.000000e+00 : f32
    %31 = vector.broadcast %cst_14 : f32 to vector<2x128xf32>
    %32 = arith.subf %31, %24 : vector<2x128xf32>
    %33 = arith.mulf %32, %30 : vector<2x128xf32>
    %34 = arith.mulf %24, %11 : vector<2x128xf32>
    %35 = arith.addf %33, %34 : vector<2x128xf32>
    %36 = vector.extract_strided_slice %10 {offsets = [2, 0], sizes = [2, 384], strides = [1, 1]} : vector<16x384xf32> to vector<2x384xf32>
    %37 = arith.truncf %35 : vector<2x128xf32> to vector<2x128xbf16>
    %cst_15 = arith.constant dense<0.000000e+00> : vector<2x384xf32>
    %38 = tpu.matmul %37, %0, %cst_15 {dimension_numbers = #tpu.dot_dimension_numbers<[1], [0], [0], [1], [0, 0, 1, 1], [], []>} : vector<2x128xbf16>, vector<128x384xbf16>, vector<2x384xf32> -> vector<2x384xf32>
    %39 = vector.extract_strided_slice %36 {offsets = [0, 0], sizes = [2, 256], strides = [1, 1]} : vector<2x384xf32> to vector<2x256xf32>
    %40 = vector.extract_strided_slice %38 {offsets = [0, 0], sizes = [2, 256], strides = [1, 1]} : vector<2x384xf32> to vector<2x256xf32>
    %41 = arith.addf %39, %40 : vector<2x256xf32>
    %42 = arith.negf %41 : vector<2x256xf32>
    %43 = math.exp %42 : vector<2x256xf32>
    %cst_16 = arith.constant 1.000000e+00 : f32
    %44 = vector.broadcast %cst_16 : f32 to vector<2x256xf32>
    %45 = arith.addf %44, %43 : vector<2x256xf32>
    %46 = arith.divf %44, %45 : vector<2x256xf32>
    %47 = vector.extract_strided_slice %46 {offsets = [0, 0], sizes = [2, 128], strides = [1, 1]} : vector<2x256xf32> to vector<2x128xf32>
    %48 = vector.extract_strided_slice %46 {offsets = [0, 128], sizes = [2, 128], strides = [1, 1]} : vector<2x256xf32> to vector<2x128xf32>
    %49 = vector.extract_strided_slice %36 {offsets = [0, 256], sizes = [2, 128], strides = [1, 1]} : vector<2x384xf32> to vector<2x128xf32>
    %50 = vector.extract_strided_slice %38 {offsets = [0, 256], sizes = [2, 128], strides = [1, 1]} : vector<2x384xf32> to vector<2x128xf32>
    %51 = arith.addf %50, %3 : vector<2x128xf32>
    %52 = arith.mulf %47, %51 : vector<2x128xf32>
    %53 = arith.addf %49, %52 : vector<2x128xf32>
    %54 = math.tanh %53 : vector<2x128xf32>
    %cst_17 = arith.constant 1.000000e+00 : f32
    %55 = vector.broadcast %cst_17 : f32 to vector<2x128xf32>
    %56 = arith.subf %55, %48 : vector<2x128xf32>
    %57 = arith.mulf %56, %54 : vector<2x128xf32>
    %58 = arith.mulf %48, %35 : vector<2x128xf32>
    %59 = arith.addf %57, %58 : vector<2x128xf32>
    %60 = vector.extract_strided_slice %10 {offsets = [4, 0], sizes = [2, 384], strides = [1, 1]} : vector<16x384xf32> to vector<2x384xf32>
    %61 = arith.truncf %59 : vector<2x128xf32> to vector<2x128xbf16>
    %cst_18 = arith.constant dense<0.000000e+00> : vector<2x384xf32>
    %62 = tpu.matmul %61, %0, %cst_18 {dimension_numbers = #tpu.dot_dimension_numbers<[1], [0], [0], [1], [0, 0, 1, 1], [], []>} : vector<2x128xbf16>, vector<128x384xbf16>, vector<2x384xf32> -> vector<2x384xf32>
    %63 = vector.extract_strided_slice %60 {offsets = [0, 0], sizes = [2, 256], strides = [1, 1]} : vector<2x384xf32> to vector<2x256xf32>
    %64 = vector.extract_strided_slice %62 {offsets = [0, 0], sizes = [2, 256], strides = [1, 1]} : vector<2x384xf32> to vector<2x256xf32>
    %65 = arith.addf %63, %64 : vector<2x256xf32>
    %66 = arith.negf %65 : vector<2x256xf32>
    %67 = math.exp %66 : vector<2x256xf32>
    %cst_19 = arith.constant 1.000000e+00 : f32
    %68 = vector.broadcast %cst_19 : f32 to vector<2x256xf32>
    %69 = arith.addf %68, %67 : vector<2x256xf32>
    %70 = arith.divf %68, %69 : vector<2x256xf32>
    %71 = vector.extract_strided_slice %70 {offsets = [0, 0], sizes = [2, 128], strides = [1, 1]} : vector<2x256xf32> to vector<2x128xf32>
    %72 = vector.extract_strided_slice %70 {offsets = [0, 128], sizes = [2, 128], strides = [1, 1]} : vector<2x256xf32> to vector<2x128xf32>
    %73 = vector.extract_strided_slice %60 {offsets = [0, 256], sizes = [2, 128], strides = [1, 1]} : vector<2x384xf32> to vector<2x128xf32>
    %74 = vector.extract_strided_slice %62 {offsets = [0, 256], sizes = [2, 128], strides = [1, 1]} : vector<2x384xf32> to vector<2x128xf32>
    %75 = arith.addf %74, %3 : vector<2x128xf32>
    %76 = arith.mulf %71, %75 : vector<2x128xf32>
    %77 = arith.addf %73, %76 : vector<2x128xf32>
    %78 = math.tanh %77 : vector<2x128xf32>
    %cst_20 = arith.constant 1.000000e+00 : f32
    %79 = vector.broadcast %cst_20 : f32 to vector<2x128xf32>
    %80 = arith.subf %79, %72 : vector<2x128xf32>
    %81 = arith.mulf %80, %78 : vector<2x128xf32>
    %82 = arith.mulf %72, %59 : vector<2x128xf32>
    %83 = arith.addf %81, %82 : vector<2x128xf32>
    %84 = vector.extract_strided_slice %10 {offsets = [6, 0], sizes = [2, 384], strides = [1, 1]} : vector<16x384xf32> to vector<2x384xf32>
    %85 = arith.truncf %83 : vector<2x128xf32> to vector<2x128xbf16>
    %cst_21 = arith.constant dense<0.000000e+00> : vector<2x384xf32>
    %86 = tpu.matmul %85, %0, %cst_21 {dimension_numbers = #tpu.dot_dimension_numbers<[1], [0], [0], [1], [0, 0, 1, 1], [], []>} : vector<2x128xbf16>, vector<128x384xbf16>, vector<2x384xf32> -> vector<2x384xf32>
    %87 = vector.extract_strided_slice %84 {offsets = [0, 0], sizes = [2, 256], strides = [1, 1]} : vector<2x384xf32> to vector<2x256xf32>
    %88 = vector.extract_strided_slice %86 {offsets = [0, 0], sizes = [2, 256], strides = [1, 1]} : vector<2x384xf32> to vector<2x256xf32>
    %89 = arith.addf %87, %88 : vector<2x256xf32>
    %90 = arith.negf %89 : vector<2x256xf32>
    %91 = math.exp %90 : vector<2x256xf32>
    %cst_22 = arith.constant 1.000000e+00 : f32
    %92 = vector.broadcast %cst_22 : f32 to vector<2x256xf32>
    %93 = arith.addf %92, %91 : vector<2x256xf32>
    %94 = arith.divf %92, %93 : vector<2x256xf32>
    %95 = vector.extract_strided_slice %94 {offsets = [0, 0], sizes = [2, 128], strides = [1, 1]} : vector<2x256xf32> to vector<2x128xf32>
    %96 = vector.extract_strided_slice %94 {offsets = [0, 128], sizes = [2, 128], strides = [1, 1]} : vector<2x256xf32> to vector<2x128xf32>
    %97 = vector.extract_strided_slice %84 {offsets = [0, 256], sizes = [2, 128], strides = [1, 1]} : vector<2x384xf32> to vector<2x128xf32>
    %98 = vector.extract_strided_slice %86 {offsets = [0, 256], sizes = [2, 128], strides = [1, 1]} : vector<2x384xf32> to vector<2x128xf32>
    %99 = arith.addf %98, %3 : vector<2x128xf32>
    %100 = arith.mulf %95, %99 : vector<2x128xf32>
    %101 = arith.addf %97, %100 : vector<2x128xf32>
    %102 = math.tanh %101 : vector<2x128xf32>
    %cst_23 = arith.constant 1.000000e+00 : f32
    %103 = vector.broadcast %cst_23 : f32 to vector<2x128xf32>
    %104 = arith.subf %103, %96 : vector<2x128xf32>
    %105 = arith.mulf %104, %102 : vector<2x128xf32>
    %106 = arith.mulf %96, %83 : vector<2x128xf32>
    %107 = arith.addf %105, %106 : vector<2x128xf32>
    %108 = vector.extract_strided_slice %10 {offsets = [8, 0], sizes = [2, 384], strides = [1, 1]} : vector<16x384xf32> to vector<2x384xf32>
    %109 = arith.truncf %107 : vector<2x128xf32> to vector<2x128xbf16>
    %cst_24 = arith.constant dense<0.000000e+00> : vector<2x384xf32>
    %110 = tpu.matmul %109, %0, %cst_24 {dimension_numbers = #tpu.dot_dimension_numbers<[1], [0], [0], [1], [0, 0, 1, 1], [], []>} : vector<2x128xbf16>, vector<128x384xbf16>, vector<2x384xf32> -> vector<2x384xf32>
    %111 = vector.extract_strided_slice %108 {offsets = [0, 0], sizes = [2, 256], strides = [1, 1]} : vector<2x384xf32> to vector<2x256xf32>
    %112 = vector.extract_strided_slice %110 {offsets = [0, 0], sizes = [2, 256], strides = [1, 1]} : vector<2x384xf32> to vector<2x256xf32>
    %113 = arith.addf %111, %112 : vector<2x256xf32>
    %114 = arith.negf %113 : vector<2x256xf32>
    %115 = math.exp %114 : vector<2x256xf32>
    %cst_25 = arith.constant 1.000000e+00 : f32
    %116 = vector.broadcast %cst_25 : f32 to vector<2x256xf32>
    %117 = arith.addf %116, %115 : vector<2x256xf32>
    %118 = arith.divf %116, %117 : vector<2x256xf32>
    %119 = vector.extract_strided_slice %118 {offsets = [0, 0], sizes = [2, 128], strides = [1, 1]} : vector<2x256xf32> to vector<2x128xf32>
    %120 = vector.extract_strided_slice %118 {offsets = [0, 128], sizes = [2, 128], strides = [1, 1]} : vector<2x256xf32> to vector<2x128xf32>
    %121 = vector.extract_strided_slice %108 {offsets = [0, 256], sizes = [2, 128], strides = [1, 1]} : vector<2x384xf32> to vector<2x128xf32>
    %122 = vector.extract_strided_slice %110 {offsets = [0, 256], sizes = [2, 128], strides = [1, 1]} : vector<2x384xf32> to vector<2x128xf32>
    %123 = arith.addf %122, %3 : vector<2x128xf32>
    %124 = arith.mulf %119, %123 : vector<2x128xf32>
    %125 = arith.addf %121, %124 : vector<2x128xf32>
    %126 = math.tanh %125 : vector<2x128xf32>
    %cst_26 = arith.constant 1.000000e+00 : f32
    %127 = vector.broadcast %cst_26 : f32 to vector<2x128xf32>
    %128 = arith.subf %127, %120 : vector<2x128xf32>
    %129 = arith.mulf %128, %126 : vector<2x128xf32>
    %130 = arith.mulf %120, %107 : vector<2x128xf32>
    %131 = arith.addf %129, %130 : vector<2x128xf32>
    %132 = vector.extract_strided_slice %10 {offsets = [10, 0], sizes = [2, 384], strides = [1, 1]} : vector<16x384xf32> to vector<2x384xf32>
    %133 = arith.truncf %131 : vector<2x128xf32> to vector<2x128xbf16>
    %cst_27 = arith.constant dense<0.000000e+00> : vector<2x384xf32>
    %134 = tpu.matmul %133, %0, %cst_27 {dimension_numbers = #tpu.dot_dimension_numbers<[1], [0], [0], [1], [0, 0, 1, 1], [], []>} : vector<2x128xbf16>, vector<128x384xbf16>, vector<2x384xf32> -> vector<2x384xf32>
    %135 = vector.extract_strided_slice %132 {offsets = [0, 0], sizes = [2, 256], strides = [1, 1]} : vector<2x384xf32> to vector<2x256xf32>
    %136 = vector.extract_strided_slice %134 {offsets = [0, 0], sizes = [2, 256], strides = [1, 1]} : vector<2x384xf32> to vector<2x256xf32>
    %137 = arith.addf %135, %136 : vector<2x256xf32>
    %138 = arith.negf %137 : vector<2x256xf32>
    %139 = math.exp %138 : vector<2x256xf32>
    %cst_28 = arith.constant 1.000000e+00 : f32
    %140 = vector.broadcast %cst_28 : f32 to vector<2x256xf32>
    %141 = arith.addf %140, %139 : vector<2x256xf32>
    %142 = arith.divf %140, %141 : vector<2x256xf32>
    %143 = vector.extract_strided_slice %142 {offsets = [0, 0], sizes = [2, 128], strides = [1, 1]} : vector<2x256xf32> to vector<2x128xf32>
    %144 = vector.extract_strided_slice %142 {offsets = [0, 128], sizes = [2, 128], strides = [1, 1]} : vector<2x256xf32> to vector<2x128xf32>
    %145 = vector.extract_strided_slice %132 {offsets = [0, 256], sizes = [2, 128], strides = [1, 1]} : vector<2x384xf32> to vector<2x128xf32>
    %146 = vector.extract_strided_slice %134 {offsets = [0, 256], sizes = [2, 128], strides = [1, 1]} : vector<2x384xf32> to vector<2x128xf32>
    %147 = arith.addf %146, %3 : vector<2x128xf32>
    %148 = arith.mulf %143, %147 : vector<2x128xf32>
    %149 = arith.addf %145, %148 : vector<2x128xf32>
    %150 = math.tanh %149 : vector<2x128xf32>
    %cst_29 = arith.constant 1.000000e+00 : f32
    %151 = vector.broadcast %cst_29 : f32 to vector<2x128xf32>
    %152 = arith.subf %151, %144 : vector<2x128xf32>
    %153 = arith.mulf %152, %150 : vector<2x128xf32>
    %154 = arith.mulf %144, %131 : vector<2x128xf32>
    %155 = arith.addf %153, %154 : vector<2x128xf32>
    %156 = vector.extract_strided_slice %10 {offsets = [12, 0], sizes = [2, 384], strides = [1, 1]} : vector<16x384xf32> to vector<2x384xf32>
    %157 = arith.truncf %155 : vector<2x128xf32> to vector<2x128xbf16>
    %cst_30 = arith.constant dense<0.000000e+00> : vector<2x384xf32>
    %158 = tpu.matmul %157, %0, %cst_30 {dimension_numbers = #tpu.dot_dimension_numbers<[1], [0], [0], [1], [0, 0, 1, 1], [], []>} : vector<2x128xbf16>, vector<128x384xbf16>, vector<2x384xf32> -> vector<2x384xf32>
    %159 = vector.extract_strided_slice %156 {offsets = [0, 0], sizes = [2, 256], strides = [1, 1]} : vector<2x384xf32> to vector<2x256xf32>
    %160 = vector.extract_strided_slice %158 {offsets = [0, 0], sizes = [2, 256], strides = [1, 1]} : vector<2x384xf32> to vector<2x256xf32>
    %161 = arith.addf %159, %160 : vector<2x256xf32>
    %162 = arith.negf %161 : vector<2x256xf32>
    %163 = math.exp %162 : vector<2x256xf32>
    %cst_31 = arith.constant 1.000000e+00 : f32
    %164 = vector.broadcast %cst_31 : f32 to vector<2x256xf32>
    %165 = arith.addf %164, %163 : vector<2x256xf32>
    %166 = arith.divf %164, %165 : vector<2x256xf32>
    %167 = vector.extract_strided_slice %166 {offsets = [0, 0], sizes = [2, 128], strides = [1, 1]} : vector<2x256xf32> to vector<2x128xf32>
    %168 = vector.extract_strided_slice %166 {offsets = [0, 128], sizes = [2, 128], strides = [1, 1]} : vector<2x256xf32> to vector<2x128xf32>
    %169 = vector.extract_strided_slice %156 {offsets = [0, 256], sizes = [2, 128], strides = [1, 1]} : vector<2x384xf32> to vector<2x128xf32>
    %170 = vector.extract_strided_slice %158 {offsets = [0, 256], sizes = [2, 128], strides = [1, 1]} : vector<2x384xf32> to vector<2x128xf32>
    %171 = arith.addf %170, %3 : vector<2x128xf32>
    %172 = arith.mulf %167, %171 : vector<2x128xf32>
    %173 = arith.addf %169, %172 : vector<2x128xf32>
    %174 = math.tanh %173 : vector<2x128xf32>
    %cst_32 = arith.constant 1.000000e+00 : f32
    %175 = vector.broadcast %cst_32 : f32 to vector<2x128xf32>
    %176 = arith.subf %175, %168 : vector<2x128xf32>
    %177 = arith.mulf %176, %174 : vector<2x128xf32>
    %178 = arith.mulf %168, %155 : vector<2x128xf32>
    %179 = arith.addf %177, %178 : vector<2x128xf32>
    %180 = vector.extract_strided_slice %10 {offsets = [14, 0], sizes = [2, 384], strides = [1, 1]} : vector<16x384xf32> to vector<2x384xf32>
    %181 = arith.truncf %179 : vector<2x128xf32> to vector<2x128xbf16>
    %cst_33 = arith.constant dense<0.000000e+00> : vector<2x384xf32>
    %182 = tpu.matmul %181, %0, %cst_33 {dimension_numbers = #tpu.dot_dimension_numbers<[1], [0], [0], [1], [0, 0, 1, 1], [], []>} : vector<2x128xbf16>, vector<128x384xbf16>, vector<2x384xf32> -> vector<2x384xf32>
    %183 = vector.extract_strided_slice %180 {offsets = [0, 0], sizes = [2, 256], strides = [1, 1]} : vector<2x384xf32> to vector<2x256xf32>
    %184 = vector.extract_strided_slice %182 {offsets = [0, 0], sizes = [2, 256], strides = [1, 1]} : vector<2x384xf32> to vector<2x256xf32>
    %185 = arith.addf %183, %184 : vector<2x256xf32>
    %186 = arith.negf %185 : vector<2x256xf32>
    %187 = math.exp %186 : vector<2x256xf32>
    %cst_34 = arith.constant 1.000000e+00 : f32
    %188 = vector.broadcast %cst_34 : f32 to vector<2x256xf32>
    %189 = arith.addf %188, %187 : vector<2x256xf32>
    %190 = arith.divf %188, %189 : vector<2x256xf32>
    %191 = vector.extract_strided_slice %190 {offsets = [0, 0], sizes = [2, 128], strides = [1, 1]} : vector<2x256xf32> to vector<2x128xf32>
    %192 = vector.extract_strided_slice %190 {offsets = [0, 128], sizes = [2, 128], strides = [1, 1]} : vector<2x256xf32> to vector<2x128xf32>
    %193 = vector.extract_strided_slice %180 {offsets = [0, 256], sizes = [2, 128], strides = [1, 1]} : vector<2x384xf32> to vector<2x128xf32>
    %194 = vector.extract_strided_slice %182 {offsets = [0, 256], sizes = [2, 128], strides = [1, 1]} : vector<2x384xf32> to vector<2x128xf32>
    %195 = arith.addf %194, %3 : vector<2x128xf32>
    %196 = arith.mulf %191, %195 : vector<2x128xf32>
    %197 = arith.addf %193, %196 : vector<2x128xf32>
    %198 = math.tanh %197 : vector<2x128xf32>
    %cst_35 = arith.constant 1.000000e+00 : f32
    %199 = vector.broadcast %cst_35 : f32 to vector<2x128xf32>
    %200 = arith.subf %199, %192 : vector<2x128xf32>
    %201 = arith.mulf %200, %198 : vector<2x128xf32>
    %202 = arith.mulf %192, %179 : vector<2x128xf32>
    %203 = arith.addf %201, %202 : vector<2x128xf32>
    %204 = vector.broadcast %4 : vector<1x128xf32> to vector<2x128xf32>
    %205 = arith.mulf %203, %204 : vector<2x128xf32>
    %cst_36 = arith.constant dense<0.000000e+00> : vector<2xf32>
    %206 = vector.multi_reduction <add>, %205, %cst_36 [1] : vector<2x128xf32> to vector<2xf32>
    %207 = vector.shape_cast %206 : vector<2xf32> to vector<2x1xf32>
    %c0_37 = arith.constant 0 : index
    %c0_38 = arith.constant 0 : index
    %208 = vector.load %arg6[%c0_37, %c0_38] : memref<1x1xf32, #tpu.memory_space<vmem>>, vector<1x1xf32>
    %209 = vector.broadcast %208 : vector<1x1xf32> to vector<2x1xf32>
    %210 = arith.addf %207, %209 : vector<2x1xf32>
    %c0_39 = arith.constant 0 : index
    %c0_40 = arith.constant 0 : index
    %211 = vector.load %arg7[%c0_39, %c0_40] : memref<2x1xf32, #tpu.memory_space<vmem>>, vector<2x1xf32>
    tpu.vector_store %arg7[%c0_39, %c0_40], %210 {strides = array<i32>} : memref<2x1xf32, #tpu.memory_space<vmem>>, vector<2x1xf32>,
    return
  }
}

</mosaic_0001>

<bundles_post_ra>
// kernel: grunet_forward.1
= control target key start
LH: loop header
LB: loop body
LE: loop exit
PB: predicated region body
PF: predicated region fallthrough
CT: control target
= control target key end

     0   :  { %v74_v0 = vlaneseq  ;;  %v1695_v1 = vmov 1983009808   ;;  %v1696_v3 = vmov 0   ;;  %v1697_v7 = vmov 0.0   ;;  %s2262_s1 = inlined_call_operand.vmem [shape: bf16[4,384], index: 1, kind: input, shape index: {}]   ;;  %s2263_s0 = inlined_call_operand.vmem [shape: bf16[16,4], index: 0, kind: input, shape index: {}]   ;;  %s2264_s2 = inlined_call_operand.vmem [shape: bf16[128,384], index: 2, kind: input, shape index: {}]   ;;  %s2265_s3 = inlined_call_operand.vmem [shape: f32[1,384], index: 3, kind: input, shape index: {}]   ;;  %s2266_s4 = inlined_call_operand.vmem [shape: f32[1,128], index: 4, kind: input, shape index: {}]   ;;  %s2267_s6 = inlined_call_operand.<no memory space> [shape: f32[1,1], index: 6, kind: input, shape index: {}]   ;;  %s2268_s5 = inlined_call_operand.vmem [shape: f32[1,128], index: 5, kind: input, shape index: {}]   ;;  %s2269_s7 = inlined_call_operand.vmem [shape: f32[2,1], index: 7, kind: output, shape index: {}]  }
   0x1   :  { %v97_v2 = vunpack.c.l.s4 %v1695_v1  ;;  %157 = vmatprep.mubr.bf16.mxu0 %v1696_v3  ;;  %v71_v4 = vld [vmem:[%s2262_s1] sm:$0x3f]  ;;  %1404 = vmatprep.subr.bf16.mxu1 %v1697_v7  ;;  %vm1698_vm0 = vmmov 0   ;;  %vm115_vm1 = vcmask 1041408   ;;  %v1752_v14 = vld [vmem:[%s2264_s2 + $0xac] ss:$12 sps:$4 sm:$0xff]  }
   0x2   :  { %v1743_v5 = vshrl.u32 %v74_v0, 7  ;;  %v95_v8 = vcombine.high %v71_v4, %v71_v4  ;;  %1406 = vmatprep.mubr.msk.bf16.mxu1 %vm1698_vm0, %v1697_v7  ;;  %v1574_v16 = vld [vmem:[%s2263_s0] sm:$0xff]   ;;  %v1760_v17 = vld [vmem:[%s2264_s2 + $0xa8] ss:$12 sps:$4 sm:$0xff]   ;;  %vm111_vm2 = vcmask 31744   ;;  %vm1265_vm3 = vcmask 1047558  }
   0x3   :  { %v98_v6 = vunpack.c.0.s8 %v97_v2  ;;  %v1766_v18 = vld [vmem:[%s2264_s2 + $0xb0] ss:$12 sps:$4 sm:$0xff]   ;;  %v1772_v19 = vld [vmem:[%s2264_s2 + $0x94] ss:$12 sps:$4 sm:$0xff]   ;;  %v1778_v20 = vld [vmem:[%s2264_s2 + $0x98] ss:$12 sps:$4 sm:$0xff]  }
   0x4   :  { %v1787_v21 = vld [vmem:[%s2264_s2 + $0x90] ss:$12 sps:$4 sm:$0xff]   ;;  %v1800_v23 = vld [vmem:[%s2264_s2 + $0x80] ss:$12 sps:$4 sm:$0xff]   ;;  %v1807_v24 = vld [vmem:[%s2264_s2 + $0x78] ss:$12 sps:$4 sm:$0xff]  }
   0x5   :  { %v101_v9 = vsub.s32 %v98_v6, %v1743_v5  ;;  %v1794_v22 = vld [vmem:[%s2264_s2 + $0x7c] ss:$12 sps:$4 sm:$0xff]   ;;  %v1813_v25 = vld [vmem:[%s2264_s2 + $0x64] ss:$12 sps:$4 sm:$0xff]   ;;  %v1826_v27 = vld [vmem:[%s2264_s2 + $0x60] ss:$12 sps:$4 sm:$0xff]  }
   0x6   :  { %v1819_v26 = vld [vmem:[%s2264_s2 + $0x68] ss:$12 sps:$4 sm:$0xff]   ;;  %v1832_v28 = vld [vmem:[%s2264_s2 + $0x4c] ss:$12 sps:$4 sm:$0xff]   ;;  %v1838_v29 = vld [vmem:[%s2264_s2 + $0x50] ss:$12 sps:$4 sm:$0xff]  }
   0x7   :  { %v102_v10 = vrot.slane %v71_v4, %v101_v9  ;;  %v109_v11 = vrot.slane %v95_v8, %v101_v9  ;;  %v1845_v30 = vld [vmem:[%s2264_s2 + $0x48] ss:$12 sps:$4 sm:$0xff]   ;;  %v1857_v32 = vld [vmem:[%s2264_s2 + $0x38] ss:$12 sps:$4 sm:$0xff]   ;;  %v1864_v33 = vld [vmem:[%s2264_s2 + $0x30] ss:$12 sps:$4 sm:$0xff]  }
   0x8   :  { %v1851_v31 = vld [vmem:[%s2264_s2 + $0x34] ss:$12 sps:$4 sm:$0xff]   ;;  %v1870_v34 = vld [vmem:[%s2264_s2 + $0x1c] ss:$12 sps:$4 sm:$0xff]   ;;  %v1883_v36 = vld [vmem:[%s2264_s2 + $0x18] ss:$12 sps:$4 sm:$0xff]  }
   0x9   :  { %v110_v12 = vcombine.high %v102_v10, %v102_v10  ;;  %v117_v13 = vsel %vm115_vm1, %v102_v10, 0  ;;  %v123_v15 = vsel %vm115_vm1, %v109_v11, 0  ;;  %v1876_v35 = vld [vmem:[%s2264_s2 + $0x20] ss:$12 sps:$4 sm:$0xff]   ;;  %v1889_v37 = vld [vmem:[%s2264_s2 + $0x4] ss:$12 sps:$4 sm:$0xff]  }
   0xa   :  { %1405 = vmatpush3.bf16.msra.mxu1 %v123_v15  ;;  %v1895_v38 = vld [vmem:[%s2264_s2 + $0x8] ss:$12 sps:$4 sm:$0xff]   ;;  %v1902_v39 = vld [vmem:[%s2264_s2] ss:$12 sps:$4 sm:$0xff]   ;;  %v84_v40 = vsub.s32 2, %v1743_v5  ;;  %v76_v43 = vsub.s32 0, %v1743_v5 }
   0xb   :  { %1285 = vmatprep.subr.msk.bf16.mxu0 %vm115_vm1, %v110_v12  ;;  %1410 = vmatprep.subr.bf16.mxu1 %v1697_v7  ;;  %v72_v41 = vld [vmem:[%s2265_s3] sm:$0x7]  ;;  %v80_v47 = vsub.s32 1, %v1743_v5  ;;  %vm1277_vm4 = vcmask 7174  }
   0xc   :  { %140 = vmatpush1.bf16.msra.mxu0 %v117_v13  ;;  %v85_v44 = vrot.slane %v72_v41, %v84_v40  ;;  %v77_v50 = vrot.slane %v72_v41, %v76_v43  ;;  %v1967_v13 = vld [vmem:[%s2266_s4] ss:$0 sm:$0xff] }
   0xd   :  { %337 = vmatprep.subr.bf16.mxu0 %v1752_v14  ;;  %1407 = vmatmul.mubr.msk.bf16.vlgmr.msra.gmra.mxu1 %vm111_vm2, %v1574_v16  ;;  %v81_v54 = vrot.slane %v72_v41, %v80_v47 }
   0xe   :  { %1411 = vmatpush3.bf16.msra.mxu1 %v1766_v18  ;;  %1426 = vmatprep.mubr.msk.bf16.mxu1 %vm1698_vm0, %v1697_v7 }
   0xf   :  { %1286 = vmatmul.mubr.msk.bf16.vlgmr.msra.gmra.mxu0 %vm111_vm2, %v1574_v16  ;;  %1412 = vmatprep.subr.bf16.mxu1 %v1697_v7 }
  0x10   :  { %338 = vmatpush1.bf16.msra.mxu0 %v1760_v17  ;;  %369 = vmatprep.mubr.bf16.mxu0 %v1696_v3 }
  0x11   :  { %339 = vmatprep.subr.bf16.mxu0 %v1772_v19 }
  0x12   :  { %1413 = vmatpush3.bf16.msra.mxu1 %v1778_v20 }
  0x13   :  { %1414 = vmatprep.subr.bf16.mxu1 %v1697_v7 }
  0x14   :  { %340 = vmatpush1.bf16.msra.mxu0 %v1787_v21 }
  0x15   :  { %341 = vmatprep.subr.bf16.mxu0 %v1794_v22 }
  0x16   :  { %1415 = vmatpush3.bf16.msra.mxu1 %v1800_v23 }
  0x17   :  { %1416 = vmatprep.subr.bf16.mxu1 %v1697_v7 }
  0x18   :  { %342 = vmatpush1.bf16.msra.mxu0 %v1807_v24 }
  0x19   :  { %343 = vmatprep.subr.bf16.mxu0 %v1813_v25 }
  0x1a   :  { %1417 = vmatpush3.bf16.msra.mxu1 %v1819_v26 }
  0x1b   :  { %1418 = vmatprep.subr.bf16.mxu1 %v1697_v7 }
  0x1c   :  { %344 = vmatpush1.bf16.msra.mxu0 %v1826_v27 }
  0x1d   :  { %345 = vmatprep.subr.bf16.mxu0 %v1832_v28 }
  0x1e   :  { %1419 = vmatpush3.bf16.msra.mxu1 %v1838_v29 }
  0x1f   :  { %1420 = vmatprep.subr.bf16.mxu1 %v1697_v7 }
  0x20   :  { %346 = vmatpush1.bf16.msra.mxu0 %v1845_v30 }
  0x21   :  { %347 = vmatprep.subr.bf16.mxu0 %v1851_v31 }
  0x22   :  { %1421 = vmatpush3.bf16.msra.mxu1 %v1857_v32 }
  0x23   :  { %1422 = vmatprep.subr.bf16.mxu1 %v1697_v7 }
  0x24   :  { %348 = vmatpush1.bf16.msra.mxu0 %v1864_v33 }
  0x25   :  { %349 = vmatprep.subr.bf16.mxu0 %v1870_v34 }
  0x26   :  { %1423 = vmatpush3.bf16.msra.mxu1 %v1876_v35 }
  0x27   :  { %1424 = vmatprep.subr.bf16.mxu1 %v1697_v7 }
  0x28   :  { %350 = vmatpush1.bf16.msra.mxu0 %v1883_v36 }
  0x29   :  { %351 = vmatprep.subr.bf16.mxu0 %v1889_v37 }
  0x2a   :  { %1425 = vmatpush3.bf16.msra.mxu1 %v1895_v38 }
  0x2b   :  { %1430 = vmatprep.subr.bf16.mxu1 %v1697_v7 }
  0x2c   :  { %352 = vmatpush1.bf16.msra.mxu0 %v1902_v39 }
  0x2d   :  { %1427 = vmatmul.mubr.bf16.vlgmr.msra.gmra.mxu1 %v1696_v3  ;;  %441 = vmatprep.subr.bf16.mxu0 %v1752_v14 }
  0x2e   :  { %1431 = vmatpush3.bf16.msra.mxu1 %v1766_v18  ;;  %1446 = vmatprep.mubr.msk.bf16.mxu1 %vm1698_vm0, %v1697_v7 }
  0x2f   :  { %370 = vmatmul.mubr.bf16.vlgmr.msra.gmra.mxu0 %v1696_v3  ;;  %1432 = vmatprep.subr.bf16.mxu1 %v1697_v7 }
  0x30   :  { %442 = vmatpush1.bf16.msra.mxu0 %v1760_v17  ;;  %473 = vmatprep.mubr.bf16.mxu0 %v1696_v3 }
  0x31   :  { %443 = vmatprep.subr.bf16.mxu0 %v1772_v19 }
  0x32   :  { %1433 = vmatpush3.bf16.msra.mxu1 %v1778_v20 }
  0x33   :  { %1434 = vmatprep.subr.bf16.mxu1 %v1697_v7 }
  0x34   :  { %444 = vmatpush1.bf16.msra.mxu0 %v1787_v21 }
  0x35   :  { %445 = vmatprep.subr.bf16.mxu0 %v1794_v22 }
  0x36   :  { %1435 = vmatpush3.bf16.msra.mxu1 %v1800_v23 }
  0x37   :  { %1436 = vmatprep.subr.bf16.mxu1 %v1697_v7 }
  0x38   :  { %446 = vmatpush1.bf16.msra.mxu0 %v1807_v24 }
  0x39   :  { %447 = vmatprep.subr.bf16.mxu0 %v1813_v25 }
  0x3a   :  { %1437 = vmatpush3.bf16.msra.mxu1 %v1819_v26 }
  0x3b   :  { %1438 = vmatprep.subr.bf16.mxu1 %v1697_v7 }
  0x3c   :  { %448 = vmatpush1.bf16.msra.mxu0 %v1826_v27 }
  0x3d   :  { %449 = vmatprep.subr.bf16.mxu0 %v1832_v28 }
  0x3e   :  { %1439 = vmatpush3.bf16.msra.mxu1 %v1838_v29 }
  0x3f   :  { %1440 = vmatprep.subr.bf16.mxu1 %v1697_v7 }
  0x40   :  { %450 = vmatpush1.bf16.msra.mxu0 %v1845_v30 }
  0x41   :  { %451 = vmatprep.subr.bf16.mxu0 %v1851_v31 }
  0x42   :  { %1441 = vmatpush3.bf16.msra.mxu1 %v1857_v32 }
  0x43   :  { %1442 = vmatprep.subr.bf16.mxu1 %v1697_v7 }
  0x44   :  { %452 = vmatpush1.bf16.msra.mxu0 %v1864_v33 }
  0x45   :  { %453 = vmatprep.subr.bf16.mxu0 %v1870_v34 }
  0x46   :  { %1443 = vmatpush3.bf16.msra.mxu1 %v1876_v35 }
  0x47   :  { %1444 = vmatprep.subr.bf16.mxu1 %v1697_v7 }
  0x48   :  { %454 = vmatpush1.bf16.msra.mxu0 %v1883_v36 }
  0x49   :  { %455 = vmatprep.subr.bf16.mxu0 %v1889_v37 }
  0x4a   :  { %1445 = vmatpush3.bf16.msra.mxu1 %v1895_v38 }
  0x4b   :  { %1450 = vmatprep.subr.bf16.mxu1 %v1697_v7 }
  0x4c   :  { %456 = vmatpush1.bf16.msra.mxu0 %v1902_v39 }
  0x4d   :  { %560 = vmatprep.subr.bf16.mxu0 %v1752_v14 }
  0xcd   :  { %v202_v42 = vpop.f32.mrf.mxu1 }
  0xce   :  { %v1970_v41 = vadd.f32 %v202_v42, %v85_v44 }
  0xcf   :  { %v159_v45 = vpop.f32.mrf.mxu0  ;;  %v1408_v46 = vpop.f32.mrf.mxu1 }
  0xd0   :  { %v1958_v59 = vadd.f32 %v159_v45, %v77_v50 }
  0xd1   :  { %v161_v48 = vpop.f32.mrf.mxu0  ;;  %v205_v49 = vpop.f32.mrf.mxu1 }
  0xd2   :  { %v1952_v51 = vadd.f32 %v205_v49, %v85_v44  ;;  %v1961_v5 = vadd.f32 %v161_v48, %v81_v54 }
  0xd3   :  { %v163_v52 = vpop.f32.mrf.mxu0  ;;  %v1409_v53 = vpop.f32.mrf.mxu1 }
  0xd4   :  { %v1954_v55 = vadd.f32 %v163_v52, %v77_v50 }
  0xd5   :  { %v165_v56 = vpop.f32.mrf.mxu0 }
  0xd6   :  { %v1956_v57 = vadd.f32 %v165_v56, %v81_v54 }
  0xed   :  { %v412_v58 = vpop.f32.mrf.mxu1 }
  0xee   :  { %v432_v16 = vadd.f32 %v1967_v13, %v412_v58 }
  0xef   :  { %v371_v60 = vpop.f32.mrf.mxu0  ;;  %v1428_v61 = vpop.f32.mrf.mxu1 }
  0xf0   :  { %v418_v62 = vadd.f32 %v371_v60, %v1958_v59 }
  0xf1   :  { %v373_v63 = vpop.f32.mrf.mxu0  ;;  %v415_v0 = vpop.f32.mrf.mxu1 }
  0xf2   :  { %v1312_v1 = vmul.f32 -1.442695, %v418_v62  ;;  %v419_v8 = vadd.f32 %v373_v63, %v1961_v5 }
  0xf3   :  { %v375_v2 = vpop.f32.mrf.mxu0  ;;  %v1429_v4 = vpop.f32.mrf.mxu1 }
  0xf4   :  { %1608 = vpow2.f32 %v1312_v1  ;;  %v1313_v9 = vmul.f32 -1.442695, %v419_v8 }
  0xf5   :  { %v376_v6 = vpop.f32.mrf.mxu0 }
  0xf6   :  { %1610 = vpow2.f32 %v1313_v9 }
 0x101   :  { %v1609_v10 = vpop.eup %1608 }
 0x102   :  { %v426_v11 = vadd.f32 1.0, %v1609_v10 }
 0x103   :  { %v1611_v12 = vpop.eup %1610 }
 0x104   :  { %1612 = vrcp.f32 %v426_v11  ;;  %v427_v15 = vadd.f32 1.0, %v1611_v12 }
 0x106   :  { %1614 = vrcp.f32 %v427_v15 }
 0x111   :  { %v1613_v40 = vpop.eup %1612 }
 0x112   :  { %v433_v43 = vmul.f32 %v1613_v40, %v432_v16 }
 0x113   :  { %v1615_v46 = vpop.eup %1614 }
 0x114   :  { %v434_v45 = vadd.f32 %v433_v43, %v1970_v41  ;;  %v436_v47 = vsub.f32 1.0, %v1615_v46  ;;  %v438_v50 = vmul.f32 0.0, %v1615_v46 }
 0x116   :  { %1616 = vtanh.f32 %v434_v45 }
 0x123   :  { %v1617_v48 = vpop.eup %1616 }
 0x124   :  { %v437_v49 = vmul.f32 %v1617_v48, %v436_v47 }
 0x126   :  { %v1973_v52 = vadd.f32 %v438_v50, %v437_v49 }
 0x128   :  { %v440_v53 = vpack.c.bf16 %v1973_v52, %v1973_v52  ;;  %v552_v46 = vrot.slane %v1973_v52, 6 }
 0x12a   :  { %474 = vmatmul.mubr.bf16.vlgmr.msra.gmra.mxu0 %v440_v53  ;;  %1447 = vmatmul.mubr.bf16.vlgmr.msra.gmra.mxu1 %v440_v53 }
 0x12b   :  { %561 = vmatpush1.bf16.msra.mxu0 %v1760_v17  ;;  %1451 = vmatpush3.bf16.msra.mxu1 %v1766_v18 }
 0x12c   :  { %562 = vmatprep.subr.bf16.mxu0 %v1772_v19  ;;  %1452 = vmatprep.subr.bf16.mxu1 %v1697_v7 }
 0x12d   :  { %592 = vmatprep.mubr.bf16.mxu0 %v1696_v3  ;;  %1466 = vmatprep.mubr.msk.bf16.mxu1 %vm1698_vm0, %v1697_v7 }
 0x12f   :  { %563 = vmatpush1.bf16.msra.mxu0 %v1787_v21  ;;  %1453 = vmatpush3.bf16.msra.mxu1 %v1778_v20 }
 0x130   :  { %564 = vmatprep.subr.bf16.mxu0 %v1794_v22  ;;  %1454 = vmatprep.subr.bf16.mxu1 %v1697_v7 }
 0x133   :  { %565 = vmatpush1.bf16.msra.mxu0 %v1807_v24  ;;  %1455 = vmatpush3.bf16.msra.mxu1 %v1800_v23 }
 0x134   :  { %566 = vmatprep.subr.bf16.mxu0 %v1813_v25  ;;  %1456 = vmatprep.subr.bf16.mxu1 %v1697_v7 }
 0x137   :  { %567 = vmatpush1.bf16.msra.mxu0 %v1826_v27  ;;  %1457 = vmatpush3.bf16.msra.mxu1 %v1819_v26 }
 0x138   :  { %568 = vmatprep.subr.bf16.mxu0 %v1832_v28  ;;  %1458 = vmatprep.subr.bf16.mxu1 %v1697_v7 }
 0x13b   :  { %569 = vmatpush1.bf16.msra.mxu0 %v1845_v30  ;;  %1459 = vmatpush3.bf16.msra.mxu1 %v1838_v29 }
 0x13c   :  { %570 = vmatprep.subr.bf16.mxu0 %v1851_v31  ;;  %1460 = vmatprep.subr.bf16.mxu1 %v1697_v7 }
 0x13f   :  { %571 = vmatpush1.bf16.msra.mxu0 %v1864_v33  ;;  %1461 = vmatpush3.bf16.msra.mxu1 %v1857_v32 }
 0x140   :  { %572 = vmatprep.subr.bf16.mxu0 %v1870_v34  ;;  %1462 = vmatprep.subr.bf16.mxu1 %v1697_v7 }
 0x143   :  { %573 = vmatpush1.bf16.msra.mxu0 %v1883_v36  ;;  %1463 = vmatpush3.bf16.msra.mxu1 %v1876_v35 }
 0x144   :  { %574 = vmatprep.subr.bf16.mxu0 %v1889_v37  ;;  %1464 = vmatprep.subr.bf16.mxu1 %v1697_v7 }
 0x147   :  { %575 = vmatpush1.bf16.msra.mxu0 %v1902_v39  ;;  %1465 = vmatpush3.bf16.msra.mxu1 %v1895_v38 }
 0x148   :  { %679 = vmatprep.subr.bf16.mxu0 %v1752_v14  ;;  %1470 = vmatprep.subr.bf16.mxu1 %v1697_v7 }
 0x1ea   :  { %v475_v42 = vpop.f32.mrf.mxu0  ;;  %v516_v44 = vpop.f32.mrf.mxu1 }
 0x1eb   :  { %v524_v54 = vrot.slane %v475_v42, 6  ;;  %v542_v11 = vadd.f32 %v1967_v13, %v516_v44 }
 0x1ec   :  { %v477_v56 = vpop.f32.mrf.mxu0  ;;  %v1448_v58 = vpop.f32.mrf.mxu1 }
 0x1ed   :  { %v528_v60 = vadd.f32 %v524_v54, %v1958_v59  ;;  %v525_v0 = vrot.slane %v477_v56, 6  ;;  %v544_v15 = vrot.slane %v542_v11, 6 }
 0x1ee   :  { %v479_v61 = vpop.f32.mrf.mxu0  ;;  %v519_v62 = vpop.f32.mrf.mxu1 }
 0x1ef   :  { %v1314_v63 = vmul.f32 -1.442695, %v528_v60  ;;  %v529_v4 = vadd.f32 %v525_v0, %v1961_v5 }
 0x1f0   :  { %v480_v1 = vpop.f32.mrf.mxu0  ;;  %v1449_v2 = vpop.f32.mrf.mxu1 }
 0x1f1   :  { %1618 = vpow2.f32 %v1314_v63  ;;  %v1315_v6 = vmul.f32 -1.442695, %v529_v4 }
 0x1f3   :  { %1620 = vpow2.f32 %v1315_v6 }
 0x1fe   :  { %v1619_v8 = vpop.eup %1618 }
 0x1ff   :  { %v536_v9 = vadd.f32 1.0, %v1619_v8 }
 0x200   :  { %v1621_v10 = vpop.eup %1620 }
 0x201   :  { %1622 = vrcp.f32 %v536_v9  ;;  %v537_v12 = vadd.f32 1.0, %v1621_v10 }
 0x203   :  { %1624 = vrcp.f32 %v537_v12 }
 0x20e   :  { %v1623_v16 = vpop.eup %1622 }
 0x20f   :  { %v546_v40 = vmul.f32 %v1623_v16, %v544_v15 }
 0x210   :  { %v1625_v45 = vpop.eup %1624 }
 0x211   :  { %v547_v43 = vadd.f32 %v546_v40, %v1970_v41  ;;  %v549_v47 = vsub.f32 1.0, %v1625_v45  ;;  %v554_v50 = vmul.f32 %v1625_v45, %v552_v46 }
 0x213   :  { %1626 = vtanh.f32 %v547_v43 }
 0x220   :  { %v1627_v48 = vpop.eup %1626 }
 0x221   :  { %v550_v49 = vmul.f32 %v1627_v48, %v549_v47 }
 0x223   :  { %v2017_v53 = vadd.f32 %v554_v50, %v550_v49 }
 0x225   :  { %v556_v42 = vpack.c.bf16 %v2017_v53, %v2017_v53  ;;  %v671_v47 = vrot.slane %v2017_v53, 6 }
 0x227   :  { %v558_v44 = vrot.slane %v556_v42, 1 }
 0x229   :  { %593 = vmatmul.mubr.bf16.vlgmr.msra.gmra.mxu0 %v558_v44  ;;  %1467 = vmatmul.mubr.bf16.vlgmr.msra.gmra.mxu1 %v558_v44 }
 0x22a   :  { %680 = vmatpush1.bf16.msra.mxu0 %v1760_v17  ;;  %1471 = vmatpush3.bf16.msra.mxu1 %v1766_v18 }
 0x22b   :  { %681 = vmatprep.subr.bf16.mxu0 %v1772_v19  ;;  %1472 = vmatprep.subr.bf16.mxu1 %v1697_v7 }
 0x22c   :  { %711 = vmatprep.mubr.bf16.mxu0 %v1696_v3  ;;  %1486 = vmatprep.mubr.msk.bf16.mxu1 %vm1698_vm0, %v1697_v7 }
 0x22e   :  { %682 = vmatpush1.bf16.msra.mxu0 %v1787_v21  ;;  %1473 = vmatpush3.bf16.msra.mxu1 %v1778_v20 }
 0x22f   :  { %683 = vmatprep.subr.bf16.mxu0 %v1794_v22  ;;  %1474 = vmatprep.subr.bf16.mxu1 %v1697_v7 }
 0x232   :  { %684 = vmatpush1.bf16.msra.mxu0 %v1807_v24  ;;  %1475 = vmatpush3.bf16.msra.mxu1 %v1800_v23 }
 0x233   :  { %685 = vmatprep.subr.bf16.mxu0 %v1813_v25  ;;  %1476 = vmatprep.subr.bf16.mxu1 %v1697_v7 }
 0x236   :  { %686 = vmatpush1.bf16.msra.mxu0 %v1826_v27  ;;  %1477 = vmatpush3.bf16.msra.mxu1 %v1819_v26 }
 0x237   :  { %687 = vmatprep.subr.bf16.mxu0 %v1832_v28  ;;  %1478 = vmatprep.subr.bf16.mxu1 %v1697_v7 }
 0x23a   :  { %688 = vmatpush1.bf16.msra.mxu0 %v1845_v30  ;;  %1479 = vmatpush3.bf16.msra.mxu1 %v1838_v29 }
 0x23b   :  { %689 = vmatprep.subr.bf16.mxu0 %v1851_v31  ;;  %1480 = vmatprep.subr.bf16.mxu1 %v1697_v7 }
 0x23e   :  { %690 = vmatpush1.bf16.msra.mxu0 %v1864_v33  ;;  %1481 = vmatpush3.bf16.msra.mxu1 %v1857_v32 }
 0x23f   :  { %691 = vmatprep.subr.bf16.mxu0 %v1870_v34  ;;  %1482 = vmatprep.subr.bf16.mxu1 %v1697_v7 }
 0x242   :  { %692 = vmatpush1.bf16.msra.mxu0 %v1883_v36  ;;  %1483 = vmatpush3.bf16.msra.mxu1 %v1876_v35 }
 0x243   :  { %693 = vmatprep.subr.bf16.mxu0 %v1889_v37  ;;  %1484 = vmatprep.subr.bf16.mxu1 %v1697_v7 }
 0x246   :  { %694 = vmatpush1.bf16.msra.mxu0 %v1902_v39  ;;  %1485 = vmatpush3.bf16.msra.mxu1 %v1895_v38 }
 0x247   :  { %798 = vmatprep.subr.bf16.mxu0 %v1752_v14  ;;  %1490 = vmatprep.subr.bf16.mxu1 %v1697_v7 }
 0x2e9   :  { %v594_v52 = vpop.f32.mrf.mxu0  ;;  %v635_v54 = vpop.f32.mrf.mxu1 }
 0x2ea   :  { %v643_v56 = vrot.slane %v594_v52, 4  ;;  %v661_v12 = vadd.f32 %v1967_v13, %v635_v54 }
 0x2eb   :  { %v596_v58 = vpop.f32.mrf.mxu0  ;;  %v1468_v60 = vpop.f32.mrf.mxu1 }
 0x2ec   :  { %v647_v61 = vadd.f32 %v643_v56, %v1958_v59  ;;  %v644_v1 = vrot.slane %v596_v58, 4  ;;  %v663_v16 = vrot.slane %v661_v12, 4 }
 0x2ed   :  { %v598_v62 = vpop.f32.mrf.mxu0  ;;  %v638_v63 = vpop.f32.mrf.mxu1 }
 0x2ee   :  { %v1316_v0 = vmul.f32 -1.442695, %v647_v61  ;;  %v648_v6 = vadd.f32 %v644_v1, %v1961_v5 }
 0x2ef   :  { %v599_v2 = vpop.f32.mrf.mxu0  ;;  %v1469_v4 = vpop.f32.mrf.mxu1 }
 0x2f0   :  { %1628 = vpow2.f32 %v1316_v0  ;;  %v1317_v8 = vmul.f32 -1.442695, %v648_v6 }
 0x2f2   :  { %1630 = vpow2.f32 %v1317_v8 }
 0x2fd   :  { %v1629_v9 = vpop.eup %1628 }
 0x2fe   :  { %v655_v10 = vadd.f32 1.0, %v1629_v9 }
 0x2ff   :  { %v1631_v11 = vpop.eup %1630 }
 0x300   :  { %1632 = vrcp.f32 %v655_v10  ;;  %v656_v15 = vadd.f32 1.0, %v1631_v11 }
 0x302   :  { %1634 = vrcp.f32 %v656_v15 }
 0x30d   :  { %v1633_v40 = vpop.eup %1632 }
 0x30e   :  { %v665_v43 = vmul.f32 %v1633_v40, %v663_v16 }
 0x30f   :  { %v1635_v46 = vpop.eup %1634 }
 0x310   :  { %v666_v45 = vadd.f32 %v665_v43, %v1970_v41  ;;  %v668_v48 = vsub.f32 1.0, %v1635_v46  ;;  %v673_v42 = vmul.f32 %v1635_v46, %v671_v47 }
 0x312   :  { %1636 = vtanh.f32 %v666_v45 }
 0x31f   :  { %v1637_v49 = vpop.eup %1636 }
 0x320   :  { %v669_v50 = vmul.f32 %v1637_v49, %v668_v48 }
 0x322   :  { %v2061_v44 = vadd.f32 %v673_v42, %v669_v50 }
 0x324   :  { %v675_v52 = vpack.c.bf16 %v2061_v44, %v2061_v44  ;;  %v790_v47 = vrot.slane %v2061_v44, 6 }
 0x326   :  { %v677_v54 = vrot.slane %v675_v52, 2 }
 0x328   :  { %712 = vmatmul.mubr.bf16.vlgmr.msra.gmra.mxu0 %v677_v54  ;;  %1487 = vmatmul.mubr.bf16.vlgmr.msra.gmra.mxu1 %v677_v54 }
 0x329   :  { %799 = vmatpush1.bf16.msra.mxu0 %v1760_v17  ;;  %1491 = vmatpush3.bf16.msra.mxu1 %v1766_v18 }
 0x32a   :  { %800 = vmatprep.subr.bf16.mxu0 %v1772_v19  ;;  %1492 = vmatprep.subr.bf16.mxu1 %v1697_v7 }
 0x32b   :  { %830 = vmatprep.mubr.bf16.mxu0 %v1696_v3  ;;  %1506 = vmatprep.mubr.msk.bf16.mxu1 %vm1698_vm0, %v1697_v7 }
 0x32d   :  { %801 = vmatpush1.bf16.msra.mxu0 %v1787_v21  ;;  %1493 = vmatpush3.bf16.msra.mxu1 %v1778_v20 }
 0x32e   :  { %802 = vmatprep.subr.bf16.mxu0 %v1794_v22  ;;  %1494 = vmatprep.subr.bf16.mxu1 %v1697_v7 }
 0x331   :  { %803 = vmatpush1.bf16.msra.mxu0 %v1807_v24  ;;  %1495 = vmatpush3.bf16.msra.mxu1 %v1800_v23 }
 0x332   :  { %804 = vmatprep.subr.bf16.mxu0 %v1813_v25  ;;  %1496 = vmatprep.subr.bf16.mxu1 %v1697_v7 }
 0x335   :  { %805 = vmatpush1.bf16.msra.mxu0 %v1826_v27  ;;  %1497 = vmatpush3.bf16.msra.mxu1 %v1819_v26 }
 0x336   :  { %806 = vmatprep.subr.bf16.mxu0 %v1832_v28  ;;  %1498 = vmatprep.subr.bf16.mxu1 %v1697_v7 }
 0x339   :  { %807 = vmatpush1.bf16.msra.mxu0 %v1845_v30  ;;  %1499 = vmatpush3.bf16.msra.mxu1 %v1838_v29 }
 0x33a   :  { %808 = vmatprep.subr.bf16.mxu0 %v1851_v31  ;;  %1500 = vmatprep.subr.bf16.mxu1 %v1697_v7 }
 0x33d   :  { %809 = vmatpush1.bf16.msra.mxu0 %v1864_v33  ;;  %1501 = vmatpush3.bf16.msra.mxu1 %v1857_v32 }
 0x33e   :  { %810 = vmatprep.subr.bf16.mxu0 %v1870_v34  ;;  %1502 = vmatprep.subr.bf16.mxu1 %v1697_v7 }
 0x341   :  { %811 = vmatpush1.bf16.msra.mxu0 %v1883_v36  ;;  %1503 = vmatpush3.bf16.msra.mxu1 %v1876_v35 }
 0x342   :  { %812 = vmatprep.subr.bf16.mxu0 %v1889_v37  ;;  %1504 = vmatprep.subr.bf16.mxu1 %v1697_v7 }
 0x345   :  { %813 = vmatpush1.bf16.msra.mxu0 %v1902_v39  ;;  %1505 = vmatpush3.bf16.msra.mxu1 %v1895_v38 }
 0x346   :  { %905 = vmatprep.subr.bf16.mxu0 %v1752_v14  ;;  %1510 = vmatprep.subr.bf16.mxu1 %v1697_v7 }
 0x3e8   :  { %v713_v53 = vpop.f32.mrf.mxu0  ;;  %v754_v56 = vpop.f32.mrf.mxu1 }
 0x3e9   :  { %v762_v58 = vrot.slane %v713_v53, 2  ;;  %v780_v15 = vadd.f32 %v1967_v13, %v754_v56 }
 0x3ea   :  { %v715_v60 = vpop.f32.mrf.mxu0  ;;  %v1488_v61 = vpop.f32.mrf.mxu1 }
 0x3eb   :  { %v766_v62 = vadd.f32 %v762_v58, %v1958_v59  ;;  %v763_v2 = vrot.slane %v715_v60, 2  ;;  %v782_v40 = vrot.slane %v780_v15, 2 }
 0x3ec   :  { %v717_v63 = vpop.f32.mrf.mxu0  ;;  %v757_v0 = vpop.f32.mrf.mxu1 }
 0x3ed   :  { %v1318_v1 = vmul.f32 -1.442695, %v766_v62  ;;  %v767_v8 = vadd.f32 %v763_v2, %v1961_v5 }
 0x3ee   :  { %v718_v4 = vpop.f32.mrf.mxu0  ;;  %v1489_v6 = vpop.f32.mrf.mxu1 }
 0x3ef   :  { %1638 = vpow2.f32 %v1318_v1  ;;  %v1319_v9 = vmul.f32 -1.442695, %v767_v8 }
 0x3f1   :  { %1640 = vpow2.f32 %v1319_v9 }
 0x3fc   :  { %v1639_v10 = vpop.eup %1638 }
 0x3fd   :  { %v774_v11 = vadd.f32 1.0, %v1639_v10 }
 0x3fe   :  { %v1641_v12 = vpop.eup %1640 }
 0x3ff   :  { %1642 = vrcp.f32 %v774_v11  ;;  %v775_v16 = vadd.f32 1.0, %v1641_v12 }
 0x401   :  { %1644 = vrcp.f32 %v775_v16 }
 0x40c   :  { %v1643_v59 = vpop.eup %1642 }
 0x40d   :  { %v784_v43 = vmul.f32 %v1643_v59, %v782_v40 }
 0x40e   :  { %v1645_v46 = vpop.eup %1644 }
 0x40f   :  { %v785_v45 = vadd.f32 %v784_v43, %v1970_v41  ;;  %v787_v5 = vsub.f32 1.0, %v1645_v46  ;;  %v792_v50 = vmul.f32 %v1645_v46, %v790_v47 }
 0x411   :  { %1646 = vtanh.f32 %v785_v45 }
 0x41e   :  { %v1647_v48 = vpop.eup %1646 }
 0x41f   :  { %v788_v49 = vmul.f32 %v1647_v48, %v787_v5 }
 0x421   :  { %v2105_v42 = vadd.f32 %v792_v50, %v788_v49 }
 0x423   :  { %v794_v52 = vpack.c.bf16 %v2105_v42, %v2105_v42  ;;  %v900_v40 = vrot.slane %v2105_v42, 6 }
 0x425   :  { %v796_v54 = vrot.slane %v794_v52, 3 }
 0x427   :  { %831 = vmatmul.mubr.bf16.vlgmr.msra.gmra.mxu0 %v796_v54  ;;  %1507 = vmatmul.mubr.bf16.vlgmr.msra.gmra.mxu1 %v796_v54 }
 0x428   :  { %906 = vmatpush1.bf16.msra.mxu0 %v1760_v17  ;;  %1511 = vmatpush3.bf16.msra.mxu1 %v1766_v18 }
 0x429   :  { %907 = vmatprep.subr.bf16.mxu0 %v1772_v19  ;;  %1512 = vmatprep.subr.bf16.mxu1 %v1697_v7 }
 0x42a   :  { %937 = vmatprep.mubr.bf16.mxu0 %v1696_v3  ;;  %1526 = vmatprep.mubr.msk.bf16.mxu1 %vm1698_vm0, %v1697_v7 }
 0x42c   :  { %908 = vmatpush1.bf16.msra.mxu0 %v1787_v21  ;;  %1513 = vmatpush3.bf16.msra.mxu1 %v1778_v20 }
 0x42d   :  { %909 = vmatprep.subr.bf16.mxu0 %v1794_v22  ;;  %1514 = vmatprep.subr.bf16.mxu1 %v1697_v7 }
 0x430   :  { %910 = vmatpush1.bf16.msra.mxu0 %v1807_v24  ;;  %1515 = vmatpush3.bf16.msra.mxu1 %v1800_v23 }
 0x431   :  { %911 = vmatprep.subr.bf16.mxu0 %v1813_v25  ;;  %1516 = vmatprep.subr.bf16.mxu1 %v1697_v7 }
 0x434   :  { %912 = vmatpush1.bf16.msra.mxu0 %v1826_v27  ;;  %1517 = vmatpush3.bf16.msra.mxu1 %v1819_v26 }
 0x435   :  { %913 = vmatprep.subr.bf16.mxu0 %v1832_v28  ;;  %1518 = vmatprep.subr.bf16.mxu1 %v1697_v7 }
 0x438   :  { %914 = vmatpush1.bf16.msra.mxu0 %v1845_v30  ;;  %1519 = vmatpush3.bf16.msra.mxu1 %v1838_v29 }
 0x439   :  { %915 = vmatprep.subr.bf16.mxu0 %v1851_v31  ;;  %1520 = vmatprep.subr.bf16.mxu1 %v1697_v7 }
 0x43c   :  { %916 = vmatpush1.bf16.msra.mxu0 %v1864_v33  ;;  %1521 = vmatpush3.bf16.msra.mxu1 %v1857_v32 }
 0x43d   :  { %917 = vmatprep.subr.bf16.mxu0 %v1870_v34  ;;  %1522 = vmatprep.subr.bf16.mxu1 %v1697_v7 }
 0x440   :  { %918 = vmatpush1.bf16.msra.mxu0 %v1883_v36  ;;  %1523 = vmatpush3.bf16.msra.mxu1 %v1876_v35 }
 0x441   :  { %919 = vmatprep.subr.bf16.mxu0 %v1889_v37  ;;  %1524 = vmatprep.subr.bf16.mxu1 %v1697_v7 }
 0x444   :  { %920 = vmatpush1.bf16.msra.mxu0 %v1902_v39  ;;  %1525 = vmatpush3.bf16.msra.mxu1 %v1895_v38 }
 0x445   :  { %1024 = vmatprep.subr.bf16.mxu0 %v1752_v14  ;;  %1530 = vmatprep.subr.bf16.mxu1 %v1697_v7 }
 0x4e7   :  { %v832_v41 = vpop.f32.mrf.mxu0  ;;  %v873_v44 = vpop.f32.mrf.mxu1 }
 0x4e8   :  { %v879_v53 = vadd.f32 %v832_v41, %v1954_v55  ;;  %v893_v10 = vadd.f32 %v1967_v13, %v873_v44 }
 0x4e9   :  { %v834_v56 = vpop.f32.mrf.mxu0  ;;  %v1508_v58 = vpop.f32.mrf.mxu1 }
 0x4ea   :  { %v1320_v60 = vmul.f32 -1.442695, %v879_v53  ;;  %v880_v1 = vadd.f32 %v834_v56, %v1956_v57 }
 0x4eb   :  { %v836_v61 = vpop.f32.mrf.mxu0  ;;  %v876_v62 = vpop.f32.mrf.mxu1 }
 0x4ec   :  { %1648 = vpow2.f32 %v1320_v60  ;;  %v1321_v2 = vmul.f32 -1.442695, %v880_v1 }
 0x4ed   :  { %v837_v63 = vpop.f32.mrf.mxu0  ;;  %v1509_v0 = vpop.f32.mrf.mxu1 }
 0x4ee   :  { %1650 = vpow2.f32 %v1321_v2 }
 0x4f9   :  { %v1649_v4 = vpop.eup %1648 }
 0x4fa   :  { %v887_v6 = vadd.f32 1.0, %v1649_v4 }
 0x4fb   :  { %v1651_v8 = vpop.eup %1650 }
 0x4fc   :  { %1652 = vrcp.f32 %v887_v6  ;;  %v888_v9 = vadd.f32 1.0, %v1651_v8 }
 0x4fe   :  { %1654 = vrcp.f32 %v888_v9 }
 0x509   :  { %v1653_v11 = vpop.eup %1652 }
 0x50a   :  { %v894_v12 = vmul.f32 %v1653_v11, %v893_v10 }
 0x50b   :  { %v1655_v16 = vpop.eup %1654 }
 0x50c   :  { %v895_v15 = vadd.f32 %v894_v12, %v1952_v51  ;;  %v897_v59 = vsub.f32 1.0, %v1655_v16  ;;  %v902_v46 = vmul.f32 %v1655_v16, %v900_v40  ;;  %v1688_v12 = vld [vmem:[%s2264_s2 + $0xa8] ss:$12 sps:$4 sm:$0xff]   ;;  %v1691_v40 = vld [vmem:[%s2264_s2 + $0x90] ss:$12 sps:$4 sm:$0xff]  }
 0x50d   :  { %v1690_v16 = vld [vmem:[%s2264_s2 + $0x94] ss:$12 sps:$4 sm:$0xff]  }
 0x50e   :  { %1656 = vtanh.f32 %v895_v15  ;;  %v1689_v15 = vld [vmem:[%s2264_s2 + $0xb0] ss:$12 sps:$4 sm:$0xff]  }
 0x51b   :  { %v1657_v43 = vpop.eup %1656 }
 0x51c   :  { %v898_v45 = vmul.f32 %v1657_v43, %v897_v59  ;;  %v1692_v59 = vld [vmem:[%s2264_s2 + $0x98] ss:$12 sps:$4 sm:$0xff]   ;;  %v1693_v43 = vld [vmem:[%s2264_s2 + $0x7c] ss:$12 sps:$4 sm:$0xff]  }
 0x51e   :  { %v2149_v47 = vadd.f32 %v902_v46, %v898_v45 }
 0x520   :  { %v904_v5 = vpack.c.bf16 %v2149_v47, %v2149_v47  ;;  %v1016_v1 = vrot.slane %v2149_v47, 6 }
 0x522   :  { %938 = vmatmul.mubr.bf16.vlgmr.msra.gmra.mxu0 %v904_v5  ;;  %1527 = vmatmul.mubr.bf16.vlgmr.msra.gmra.mxu1 %v904_v5 }
 0x523   :  { %1025 = vmatpush1.bf16.msra.mxu0 %v1760_v17  ;;  %1531 = vmatpush3.bf16.msra.mxu1 %v1766_v18 }
 0x524   :  { %1026 = vmatprep.subr.bf16.mxu0 %v1772_v19  ;;  %1532 = vmatprep.subr.bf16.mxu1 %v1697_v7 }
 0x525   :  { %1056 = vmatprep.mubr.bf16.mxu0 %v1696_v3  ;;  %1546 = vmatprep.mubr.msk.bf16.mxu1 %vm1698_vm0, %v1697_v7 }
 0x527   :  { %1027 = vmatpush1.bf16.msra.mxu0 %v1787_v21  ;;  %1533 = vmatpush3.bf16.msra.mxu1 %v1778_v20 }
 0x528   :  { %1028 = vmatprep.subr.bf16.mxu0 %v1794_v22  ;;  %1534 = vmatprep.subr.bf16.mxu1 %v1697_v7 }
 0x52b   :  { %1029 = vmatpush1.bf16.msra.mxu0 %v1807_v24  ;;  %1535 = vmatpush3.bf16.msra.mxu1 %v1800_v23 }
 0x52c   :  { %1030 = vmatprep.subr.bf16.mxu0 %v1813_v25  ;;  %1536 = vmatprep.subr.bf16.mxu1 %v1697_v7 }
 0x52f   :  { %1031 = vmatpush1.bf16.msra.mxu0 %v1826_v27  ;;  %1537 = vmatpush3.bf16.msra.mxu1 %v1819_v26 }
 0x530   :  { %1032 = vmatprep.subr.bf16.mxu0 %v1832_v28  ;;  %1538 = vmatprep.subr.bf16.mxu1 %v1697_v7 }
 0x533   :  { %1033 = vmatpush1.bf16.msra.mxu0 %v1845_v30  ;;  %1539 = vmatpush3.bf16.msra.mxu1 %v1838_v29 }
 0x534   :  { %1034 = vmatprep.subr.bf16.mxu0 %v1851_v31  ;;  %1540 = vmatprep.subr.bf16.mxu1 %v1697_v7 }
 0x537   :  { %1035 = vmatpush1.bf16.msra.mxu0 %v1864_v33  ;;  %1541 = vmatpush3.bf16.msra.mxu1 %v1857_v32 }
 0x538   :  { %1036 = vmatprep.subr.bf16.mxu0 %v1870_v34  ;;  %1542 = vmatprep.subr.bf16.mxu1 %v1697_v7 }
 0x53b   :  { %1037 = vmatpush1.bf16.msra.mxu0 %v1883_v36  ;;  %1543 = vmatpush3.bf16.msra.mxu1 %v1876_v35 }
 0x53c   :  { %1038 = vmatprep.subr.bf16.mxu0 %v1889_v37  ;;  %1544 = vmatprep.subr.bf16.mxu1 %v1697_v7 }
 0x53f   :  { %1039 = vmatpush1.bf16.msra.mxu0 %v1902_v39  ;;  %1545 = vmatpush3.bf16.msra.mxu1 %v1895_v38 }
 0x540   :  { %1143 = vmatprep.subr.bf16.mxu0 %v1752_v14  ;;  %1550 = vmatprep.subr.bf16.mxu1 %v1697_v7 }
 0x5e2   :  { %v939_v17 = vpop.f32.mrf.mxu0  ;;  %v980_v18 = vpop.f32.mrf.mxu1 }
 0x5e3   :  { %v988_v19 = vrot.slane %v939_v17, 6  ;;  %v1006_v56 = vadd.f32 %v1967_v13, %v980_v18 }
 0x5e4   :  { %v941_v20 = vpop.f32.mrf.mxu0  ;;  %v1528_v21 = vpop.f32.mrf.mxu1 }
 0x5e5   :  { %v992_v22 = vadd.f32 %v988_v19, %v1954_v55  ;;  %v989_v50 = vrot.slane %v941_v20, 6  ;;  %v1008_v60 = vrot.slane %v1006_v56, 6 }
 0x5e6   :  { %v943_v23 = vpop.f32.mrf.mxu0  ;;  %v983_v48 = vpop.f32.mrf.mxu1 }
 0x5e7   :  { %v1322_v49 = vmul.f32 -1.442695, %v992_v22  ;;  %v993_v54 = vadd.f32 %v989_v50, %v1956_v57 }
 0x5e8   :  { %v944_v42 = vpop.f32.mrf.mxu0  ;;  %v1529_v52 = vpop.f32.mrf.mxu1 }
 0x5e9   :  { %1658 = vpow2.f32 %v1322_v49  ;;  %v1323_v41 = vmul.f32 -1.442695, %v993_v54  ;;  %v12_v52 = vstv %s2267_s6 }
 0x5ea   :  { %13 = vst [vmem:[#allocation2] sm:$0x1] %v12_v52 }
 0x5eb   :  { %1660 = vpow2.f32 %v1323_v41 }
 0x5f6   :  { %v1659_v14 = vpop.eup %1658 }
 0x5f7   :  { %v1000_v44 = vadd.f32 1.0, %v1659_v14 }
 0x5f8   :  { %v1661_v53 = vpop.eup %1660 }
 0x5f9   :  { %1662 = vrcp.f32 %v1000_v44  ;;  %v1001_v58 = vadd.f32 1.0, %v1661_v53 }
 0x5fb   :  { %1664 = vrcp.f32 %v1001_v58 }
 0x606   :  { %v1663_v61 = vpop.eup %1662 }
 0x607   :  { %v1010_v62 = vmul.f32 %v1663_v61, %v1008_v60 }
 0x608   :  { %v1665_v0 = vpop.eup %1664 }
 0x609   :  { %v1011_v63 = vadd.f32 %v1010_v62, %v1952_v51  ;;  %v1013_v2 = vsub.f32 1.0, %v1665_v0  ;;  %v1018_v8 = vmul.f32 %v1665_v0, %v1016_v1 }
 0x60b   :  { %1666 = vtanh.f32 %v1011_v63 }
 0x618   :  { %v1667_v4 = vpop.eup %1666 }
 0x619   :  { %v1014_v6 = vmul.f32 %v1667_v4, %v1013_v2 }
 0x61b   :  { %v2193_v9 = vadd.f32 %v1018_v8, %v1014_v6 }
 0x61d   :  { %v1020_v10 = vpack.c.bf16 %v2193_v9, %v2193_v9  ;;  %v1135_v20 = vrot.slane %v2193_v9, 6 }
 0x61f   :  { %v1022_v11 = vrot.slane %v1020_v10, 1 }
 0x621   :  { %1057 = vmatmul.mubr.bf16.vlgmr.msra.gmra.mxu0 %v1022_v11  ;;  %1547 = vmatmul.mubr.bf16.vlgmr.msra.gmra.mxu1 %v1022_v11 }
 0x622   :  { %1144 = vmatpush1.bf16.msra.mxu0 %v1688_v12  ;;  %1551 = vmatpush3.bf16.msra.mxu1 %v1689_v15 }
 0x623   :  { %1145 = vmatprep.subr.bf16.mxu0 %v1690_v16  ;;  %1552 = vmatprep.subr.bf16.mxu1 %v1697_v7 }
 0x624   :  { %1175 = vmatprep.mubr.bf16.mxu0 %v1696_v3  ;;  %1566 = vmatprep.mubr.msk.bf16.mxu1 %vm1698_vm0, %v1697_v7  ;;  %v1694_v3 = vld [vmem:[%s2264_s2 + $0x80] ss:$12 sps:$4 sm:$0xff]  }
 0x626   :  { %1146 = vmatpush1.bf16.msra.mxu0 %v1691_v40  ;;  %1553 = vmatpush3.bf16.msra.mxu1 %v1692_v59 }
 0x627   :  { %1147 = vmatprep.subr.bf16.mxu0 %v1693_v43  ;;  %1554 = vmatprep.subr.bf16.mxu1 %v1697_v7 }
 0x62a   :  { %1148 = vmatpush1.bf16.msra.mxu0 %v1807_v24  ;;  %1555 = vmatpush3.bf16.msra.mxu1 %v1694_v3 }
 0x62b   :  { %1149 = vmatprep.subr.bf16.mxu0 %v1813_v25  ;;  %1556 = vmatprep.subr.bf16.mxu1 %v1697_v7 }
 0x62e   :  { %1150 = vmatpush1.bf16.msra.mxu0 %v1826_v27  ;;  %1557 = vmatpush3.bf16.msra.mxu1 %v1819_v26 }
 0x62f   :  { %1151 = vmatprep.subr.bf16.mxu0 %v1832_v28  ;;  %1558 = vmatprep.subr.bf16.mxu1 %v1697_v7 }
 0x632   :  { %1152 = vmatpush1.bf16.msra.mxu0 %v1845_v30  ;;  %1559 = vmatpush3.bf16.msra.mxu1 %v1838_v29 }
 0x633   :  { %1153 = vmatprep.subr.bf16.mxu0 %v1851_v31  ;;  %1560 = vmatprep.subr.bf16.mxu1 %v1697_v7 }
 0x636   :  { %1154 = vmatpush1.bf16.msra.mxu0 %v1864_v33  ;;  %1561 = vmatpush3.bf16.msra.mxu1 %v1857_v32 }
 0x637   :  { %1155 = vmatprep.subr.bf16.mxu0 %v1870_v34  ;;  %1562 = vmatprep.subr.bf16.mxu1 %v1697_v7 }
 0x63a   :  { %1156 = vmatpush1.bf16.msra.mxu0 %v1883_v36  ;;  %1563 = vmatpush3.bf16.msra.mxu1 %v1876_v35 }
 0x63b   :  { %1157 = vmatprep.subr.bf16.mxu0 %v1889_v37  ;;  %1564 = vmatprep.subr.bf16.mxu1 %v1697_v7 }
 0x63e   :  { %1158 = vmatpush1.bf16.msra.mxu0 %v1902_v39  ;;  %1565 = vmatpush3.bf16.msra.mxu1 %v1895_v38 }
 0x6e1   :  { %v1058_v24 = vpop.f32.mrf.mxu0  ;;  %v1099_v25 = vpop.f32.mrf.mxu1 }
 0x6e2   :  { %v1107_v26 = vrot.slane %v1058_v24, 4  ;;  %v1125_v45 = vadd.f32 %v1967_v13, %v1099_v25  ;;  %v1328_v24 = vld [vmem:[%s2268_s5] ss:$0 sm:$0xff] }
 0x6e3   :  { %v1060_v27 = vpop.f32.mrf.mxu0  ;;  %v1548_v28 = vpop.f32.mrf.mxu1 }
 0x6e4   :  { %v1111_v29 = vadd.f32 %v1107_v26, %v1954_v55  ;;  %v1108_v33 = vrot.slane %v1060_v27, 4  ;;  %v1127_v47 = vrot.slane %v1125_v45, 4  ;;  %v1329_v27 = vld [vmem:[#allocation2] ss:$0 sm:$0xff] }
 0x6e5   :  { %v1062_v30 = vpop.f32.mrf.mxu0  ;;  %v1102_v31 = vpop.f32.mrf.mxu1 }
 0x6e6   :  { %v1324_v32 = vmul.f32 -1.442695, %v1111_v29  ;;  %v1112_v7 = vadd.f32 %v1108_v33, %v1956_v57 }
 0x6e7   :  { %v1063_v34 = vpop.f32.mrf.mxu0  ;;  %v1549_v35 = vpop.f32.mrf.mxu1 }
 0x6e8   :  { %1668 = vpow2.f32 %v1324_v32  ;;  %v1325_v36 = vmul.f32 -1.442695, %v1112_v7 }
 0x6ea   :  { %1670 = vpow2.f32 %v1325_v36 }
 0x6f5   :  { %v1669_v37 = vpop.eup %1668 }
 0x6f6   :  { %v1119_v38 = vadd.f32 1.0, %v1669_v37 }
 0x6f7   :  { %v1671_v39 = vpop.eup %1670 }
 0x6f8   :  { %1672 = vrcp.f32 %v1119_v38  ;;  %v1120_v46 = vadd.f32 1.0, %v1671_v39 }
 0x6fa   :  { %1674 = vrcp.f32 %v1120_v46 }
 0x705   :  { %v1673_v5 = vpop.eup %1672 }
 0x706   :  { %v1129_v17 = vmul.f32 %v1673_v5, %v1127_v47 }
 0x707   :  { %v1675_v19 = vpop.eup %1674 }
 0x708   :  { %v1130_v18 = vadd.f32 %v1129_v17, %v1952_v51  ;;  %v1132_v21 = vsub.f32 1.0, %v1675_v19  ;;  %v1137_v48 = vmul.f32 %v1675_v19, %v1135_v20 }
 0x70a   :  { %1676 = vtanh.f32 %v1130_v18 }
 0x717   :  { %v1677_v22 = vpop.eup %1676 }
 0x718   :  { %v1133_v23 = vmul.f32 %v1677_v22, %v1132_v21 }
 0x71a   :  { %v1138_v49 = vadd.f32 %v1137_v48, %v1133_v23 }
 0x71c   :  { %v1139_v50 = vpack.c.bf16 %v1138_v49, %v1138_v49  ;;  %v1254_v59 = vrot.slane %v1138_v49, 6 }
 0x71e   :  { %v1141_v42 = vrot.slane %v1139_v50, 2 }
 0x720   :  { %1176 = vmatmul.mubr.bf16.vlgmr.msra.gmra.mxu0 %v1141_v42  ;;  %1567 = vmatmul.mubr.bf16.vlgmr.msra.gmra.mxu1 %v1141_v42 }
 0x7e0   :  { %v1177_v54 = vpop.f32.mrf.mxu0  ;;  %v1218_v41 = vpop.f32.mrf.mxu1 }
 0x7e1   :  { %v1226_v14 = vrot.slane %v1177_v54, 2  ;;  %v1244_v9 = vadd.f32 %v1967_v13, %v1218_v41 }
 0x7e2   :  { %v1179_v44 = vpop.f32.mrf.mxu0  ;;  %v1568_v53 = vpop.f32.mrf.mxu1 }
 0x7e3   :  { %v1230_v56 = vadd.f32 %v1226_v14, %v1954_v55  ;;  %v1227_v62 = vrot.slane %v1179_v44, 2  ;;  %v1246_v11 = vrot.slane %v1244_v9, 2 }
 0x7e4   :  { %v1181_v58 = vpop.f32.mrf.mxu0  ;;  %v1221_v60 = vpop.f32.mrf.mxu1 }
 0x7e5   :  { %v1326_v61 = vmul.f32 -1.442695, %v1230_v56  ;;  %v1231_v1 = vadd.f32 %v1227_v62, %v1956_v57 }
 0x7e6   :  { %v1182_v63 = vpop.f32.mrf.mxu0  ;;  %v1569_v0 = vpop.f32.mrf.mxu1 }
 0x7e7   :  { %1678 = vpow2.f32 %v1326_v61  ;;  %v1327_v2 = vmul.f32 -1.442695, %v1231_v1 }
 0x7e9   :  { %1680 = vpow2.f32 %v1327_v2 }
 0x7f4   :  { %v1679_v4 = vpop.eup %1678 }
 0x7f5   :  { %v1238_v6 = vadd.f32 1.0, %v1679_v4 }
 0x7f6   :  { %v1681_v8 = vpop.eup %1680 }
 0x7f7   :  { %1682 = vrcp.f32 %v1238_v6  ;;  %v1239_v10 = vadd.f32 1.0, %v1681_v8 }
 0x7f9   :  { %1684 = vrcp.f32 %v1239_v10 }
 0x804   :  { %v1683_v55 = vpop.eup %1682 }
 0x805   :  { %v1248_v12 = vmul.f32 %v1683_v55, %v1246_v11 }
 0x806   :  { %v1685_v16 = vpop.eup %1684 }
 0x807   :  { %v1249_v15 = vadd.f32 %v1248_v12, %v1952_v51  ;;  %v1251_v40 = vsub.f32 1.0, %v1685_v16  ;;  %v1256_v3 = vmul.f32 %v1685_v16, %v1254_v59 }
 0x809   :  { %1686 = vtanh.f32 %v1249_v15 }
 0x816   :  { %v1687_v57 = vpop.eup %1686 }
 0x817   :  { %v1252_v43 = vmul.f32 %v1687_v57, %v1251_v40 }
 0x819   :  { %v1257_v25 = vadd.f32 %v1256_v3, %v1252_v43 }
 0x81b   :  { %v1264_v13 = vmul.f32 %v1328_v24, %v1257_v25 }
 0x81d   :  { %v1266_v26 = vsel %vm1265_vm3, %v1264_v13, 0.0 }
 0x81e   :  { %1267 = vadd.xlane.f32.xlu0 %v1266_v26 }
 0x8a7   :  { %v1268_v28 = vpop.xlane.xlu0 %1267 }
 0x8a8   :  { %v1276_v51 = vadd.f32 %v1329_v27, %v1268_v28 }
 0x8aa   :  { %1278 = vst.msk [vmem:[%s2269_s7 - $0x6] sm:$0xc0] %vm1277_vm4, %v1276_v51 }

</bundles_post_ra>
